<compile_context>
chip_gen: v6e
topology: v6e:2x2x1
jax: 0.10.0
libtpu: 0.0.40
codegen_flags: <defaults>
</compile_context>

<pallas_src>
import functools

import jax
import jax.numpy as jnp
from jax.experimental import pallas as pl
from jax.experimental.pallas import tpu as pltpu

NP = 128  # lane-dense padded width of the fused actor+critic head output


def _elu(x):
    return jnp.where(x > 0, x, jnp.exp(x) - 1.0)


def actor_critic_kernel(state_ref, mask_ref, keep1_ref, keep2_ref,
                        w1_ref, b1_ref, w2_ref, b2_ref,
                        wh_ref, bh_ref, out_ref, *, act_dim):
    # ---- shared trunk -------------------------------------------------------
    x = jnp.dot(state_ref[...], w1_ref[...],
                preferred_element_type=jnp.float32) + b1_ref[...]
    x = _elu(x) * keep1_ref[...]        # dropout p=0.5 (keep mask pre-scaled by 2)

    x = jnp.dot(x, w2_ref[...],
                preferred_element_type=jnp.float32) + b2_ref[...]
    x = _elu(x) * keep2_ref[...]

    # ---- fused actor+critic head: one MXU pass, 128 lanes wide --------------
    head = jnp.dot(x, wh_ref[...],
                   preferred_element_type=jnp.float32) + bh_ref[...]

    col = jax.lax.broadcasted_iota(jnp.int32, head.shape, 1)
    is_actor = col < act_dim

    # Masked logits -> softmax over the actor columns only (padded columns get
    # -inf so they contribute exactly 0 to the denominator).
    logits = jnp.where(is_actor,
                       jnp.where(mask_ref[...] != 0, head,
                                 jnp.float32(-999999.0)),
                       jnp.float32(-jnp.inf))
    m = jnp.max(logits, axis=-1, keepdims=True)
    e = jnp.exp(logits - m)
    probs = e / jnp.sum(e, axis=-1, keepdims=True)

    # Single lane-dense output slab: [probs | value | zero padding].
    out_ref[...] = jnp.where(is_actor, probs,
                             jnp.where(col == act_dim, head, 0.0))


def actor_critic_forward(state, act_mask, params, key):
    """state: [B, state_dim] f32, act_mask: [B, act_dim] int32 (0/1).
    Returns (probs [B, act_dim], values [B, 1])."""
    B, state_dim = state.shape
    h1 = params["w1"].shape[1]
    h2 = params["w2"].shape[1]
    act_dim = params["wa"].shape[1]
    assert act_dim + 1 <= NP

    # Pad batch to a sublane-friendly size and pick the batch tile.
    if B <= 128:
        Bp = max(8, ((B + 7) // 8) * 8)
        TB = Bp
    else:
        Bp = ((B + 127) // 128) * 128
        TB = 128

    pad_b = Bp - B
    state_p = jnp.pad(state.astype(jnp.float32), ((0, pad_b), (0, 0)))
    mask_p = jnp.pad(act_mask.astype(jnp.int32),
                     ((0, pad_b), (0, NP - act_dim)))

    # Dropout keep/scale masks (p=0.5, scaled by 1/(1-p)=2), unique per element
    # across the whole padded batch -> no per-tile mask reuse.
    k1, k2 = jax.random.split(key)
    keep1 = jax.random.bernoulli(k1, 0.5, (Bp, h1)).astype(jnp.float32) * 2.0
    keep2 = jax.random.bernoulli(k2, 0.5, (Bp, h2)).astype(jnp.float32) * 2.0

    # Fused + lane-padded actor||critic head: columns [0, act_dim) = actor,
    # column act_dim = critic, rest zero.
    w_head = jnp.zeros((h2, NP), jnp.float32)
    w_head = w_head.at[:, :act_dim].set(params["wa"])
    w_head = w_head.at[:, act_dim:act_dim + 1].set(params["wc"])
    b_head = jnp.zeros((1, NP), jnp.float32)
    b_head = b_head.at[:, :act_dim].set(params["ba"])
    b_head = b_head.at[:, act_dim:act_dim + 1].set(params["bc"])

    grid = (Bp // TB,)

    def batch_tile(width):
        return pl.BlockSpec((TB, width), lambda i: (i, 0))

    def resident(rows, cols):
        return pl.BlockSpec((rows, cols), lambda i: (0, 0))

    out = pl.pallas_call(
        functools.partial(actor_critic_kernel, act_dim=act_dim),
        out_shape=jax.ShapeDtypeStruct((Bp, NP), jnp.float32),
        grid=grid,
        in_specs=[
            batch_tile(state_dim),     # state
            batch_tile(NP),            # action mask (lane-padded)
            batch_tile(h1),            # dropout keep/scale mask 1
            batch_tile(h2),            # dropout keep/scale mask 2
            resident(state_dim, h1),   # w1 (resident across batch tiles)
            resident(1, h1),           # b1
            resident(h1, h2),          # w2
            resident(1, h2),           # b2
            resident(h2, NP),          # fused actor||critic weight
            resident(1, NP),           # fused actor||critic bias
        ],
        out_specs=batch_tile(NP),
        compiler_params=pltpu.CompilerParams(
            dimension_semantics=("parallel",)),
    )(state_p, mask_p, keep1, keep2,
      params["w1"], params["b1"], params["w2"], params["b2"],
      w_head, b_head)

    probs = out[:B, :act_dim]
    values = out[:B, act_dim:act_dim + 1]
    return probs, values


def init_params(key, state_dim, act_dim, hidden_sizes):
    """PyTorch-style Linear init: U(-1/sqrt(fan_in), 1/sqrt(fan_in)).
    Weights stored [in, out] (pre-transposed), biases as [1, out]."""
    h1, h2 = hidden_sizes

    def linear(k, fan_in, fan_out):
        kw, kb = jax.random.split(k)
        bound = 1.0 / jnp.sqrt(jnp.float32(fan_in))
        w = jax.random.uniform(kw, (fan_in, fan_out), jnp.float32, -bound, bound)
        b = jax.random.uniform(kb, (1, fan_out), jnp.float32, -bound, bound)
        return w, b

    k1, k2, k3, k4 = jax.random.split(key, 4)
    w1, b1 = linear(k1, state_dim, h1)
    w2, b2 = linear(k2, h1, h2)
    wa, ba = linear(k3, h2, act_dim)
    wc, bc = linear(k4, h2, 1)
    return dict(w1=w1, b1=b1, w2=w2, b2=b2, wa=wa, ba=ba, wc=wc, bc=bc)


if __name__ == "__main__":
    # Small, module-consistent shapes.
    B, STATE_DIM, ACT_DIM = 8, 16, 8
    HIDDEN_SIZES = [64, 32]

    key = jax.random.PRNGKey(0)
    kp, ks, km, kd = jax.random.split(key, 4)

    params = init_params(kp, STATE_DIM, ACT_DIM, HIDDEN_SIZES)

    state = jax.random.normal(ks, (B, STATE_DIM), jnp.float32)
    # Random action mask (0/1); force column 0 valid so every row has >=1 action.
    act_mask = (jax.random.uniform(km, (B, ACT_DIM)) > 0.4).astype(jnp.int32)
    act_mask = act_mask.at[:, 0].set(1)

    probs, values = actor_critic_forward(state, act_mask, params, kd)
    jax.block_until_ready((probs, values))

    assert probs.shape == (B, ACT_DIM) and values.shape == (B, 1)
    # Probabilities must sum to 1 per row and masked-out actions must be ~0.
    assert jnp.allclose(jnp.sum(probs, axis=-1), 1.0, atol=1e-5)
    assert jnp.all(jnp.where(act_mask == 0, probs, 0.0) < 1e-6)
    assert jnp.all(jnp.isfinite(values))

    print("KERNEL_OK")
</pallas_src>

<mosaic_0001>
module attributes {stable_mosaic.version = 11 : i64} {
  func.func @actor_critic_kernel(%arg0: i32, %arg1: memref<8x16xf32, #tpu.memory_space<vmem>>, %arg2: memref<8x128xi32, #tpu.memory_space<vmem>>, %arg3: memref<8x64xf32, #tpu.memory_space<vmem>>, %arg4: memref<8x32xf32, #tpu.memory_space<vmem>>, %arg5: memref<16x64xf32, #tpu.memory_space<vmem>>, %arg6: memref<1x64xf32, #tpu.memory_space<vmem>>, %arg7: memref<64x32xf32, #tpu.memory_space<vmem>>, %arg8: memref<1x32xf32, #tpu.memory_space<vmem>>, %arg9: memref<32x128xf32, #tpu.memory_space<vmem>>, %arg10: memref<1x128xf32, #tpu.memory_space<vmem>>, %arg11: memref<8x128xf32, #tpu.memory_space<vmem>>) attributes {dimension_semantics = [#tpu.dimension_semantics<parallel>], iteration_bounds = array<i64: 1>, scalar_prefetch = 0 : i64, scratch_operands = 0 : i64, tpu.core_type = #tpu.core_type<tc>, window_params = [{transform_indices = @transform_0, window_bounds = array<i64: 8, 16>}, {transform_indices = @transform_1, window_bounds = array<i64: 8, 128>}, {transform_indices = @transform_2, window_bounds = array<i64: 8, 64>}, {transform_indices = @transform_3, window_bounds = array<i64: 8, 32>}, {pipeline_mode = #tpu.pipeline_mode<synchronous>, transform_indices = @transform_4, window_bounds = array<i64: 16, 64>}, {pipeline_mode = #tpu.pipeline_mode<synchronous>, transform_indices = @transform_5, window_bounds = array<i64: 1, 64>}, {pipeline_mode = #tpu.pipeline_mode<synchronous>, transform_indices = @transform_6, window_bounds = array<i64: 64, 32>}, {pipeline_mode = #tpu.pipeline_mode<synchronous>, transform_indices = @transform_7, window_bounds = array<i64: 1, 32>}, {pipeline_mode = #tpu.pipeline_mode<synchronous>, transform_indices = @transform_8, window_bounds = array<i64: 32, 128>}, {pipeline_mode = #tpu.pipeline_mode<synchronous>, transform_indices = @transform_9, window_bounds = array<i64: 1, 128>}, {transform_indices = @transform_10, window_bounds = array<i64: 8, 128>}]} {
    %c0 = arith.constant 0 : index
    %c0_0 = arith.constant 0 : index
    %0 = vector.load %arg1[%c0, %c0_0] : memref<8x16xf32, #tpu.memory_space<vmem>>, vector<8x16xf32>
    %c0_1 = arith.constant 0 : index
    %c0_2 = arith.constant 0 : index
    %1 = vector.load %arg5[%c0_1, %c0_2] : memref<16x64xf32, #tpu.memory_space<vmem>>, vector<16x64xf32>
    %cst = arith.constant dense<0.000000e+00> : vector<8x64xf32>
    %2 = tpu.matmul %0, %1, %cst {dimension_numbers = #tpu.dot_dimension_numbers<[1], [0], [0], [1], [0, 0, 1, 1], [], []>} : vector<8x16xf32>, vector<16x64xf32>, vector<8x64xf32> -> vector<8x64xf32>
    %c0_3 = arith.constant 0 : index
    %c0_4 = arith.constant 0 : index
    %3 = vector.load %arg6[%c0_3, %c0_4] : memref<1x64xf32, #tpu.memory_space<vmem>>, vector<1x64xf32>
    %4 = vector.broadcast %3 : vector<1x64xf32> to vector<8x64xf32>
    %5 = arith.addf %2, %4 : vector<8x64xf32>
    %cst_5 = arith.constant 0.000000e+00 : f32
    %6 = vector.broadcast %cst_5 : f32 to vector<8x64xf32>
    %7 = arith.cmpf ogt, %5, %6 : vector<8x64xf32>
    %8 = math.exp %5 : vector<8x64xf32>
    %cst_6 = arith.constant 1.000000e+00 : f32
    %9 = vector.broadcast %cst_6 : f32 to vector<8x64xf32>
    %10 = arith.subf %8, %9 : vector<8x64xf32>
    %11 = arith.select %7, %5, %10 : vector<8x64xi1>, vector<8x64xf32>
    %c0_7 = arith.constant 0 : index
    %c0_8 = arith.constant 0 : index
    %12 = vector.load %arg3[%c0_7, %c0_8] : memref<8x64xf32, #tpu.memory_space<vmem>>, vector<8x64xf32>
    %13 = arith.mulf %11, %12 : vector<8x64xf32>
    %c0_9 = arith.constant 0 : index
    %c0_10 = arith.constant 0 : index
    %14 = vector.load %arg7[%c0_9, %c0_10] : memref<64x32xf32, #tpu.memory_space<vmem>>, vector<64x32xf32>
    %cst_11 = arith.constant dense<0.000000e+00> : vector<8x32xf32>
    %15 = tpu.matmul %13, %14, %cst_11 {dimension_numbers = #tpu.dot_dimension_numbers<[1], [0], [0], [1], [0, 0, 1, 1], [], []>} : vector<8x64xf32>, vector<64x32xf32>, vector<8x32xf32> -> vector<8x32xf32>
    %c0_12 = arith.constant 0 : index
    %c0_13 = arith.constant 0 : index
    %16 = vector.load %arg8[%c0_12, %c0_13] : memref<1x32xf32, #tpu.memory_space<vmem>>, vector<1x32xf32>
    %17 = vector.broadcast %16 : vector<1x32xf32> to vector<8x32xf32>
    %18 = arith.addf %15, %17 : vector<8x32xf32>
    %cst_14 = arith.constant 0.000000e+00 : f32
    %19 = vector.broadcast %cst_14 : f32 to vector<8x32xf32>
    %20 = arith.cmpf ogt, %18, %19 : vector<8x32xf32>
    %21 = math.exp %18 : vector<8x32xf32>
    %cst_15 = arith.constant 1.000000e+00 : f32
    %22 = vector.broadcast %cst_15 : f32 to vector<8x32xf32>
    %23 = arith.subf %21, %22 : vector<8x32xf32>
    %24 = arith.select %20, %18, %23 : vector<8x32xi1>, vector<8x32xf32>
    %c0_16 = arith.constant 0 : index
    %c0_17 = arith.constant 0 : index
    %25 = vector.load %arg4[%c0_16, %c0_17] : memref<8x32xf32, #tpu.memory_space<vmem>>, vector<8x32xf32>
    %26 = arith.mulf %24, %25 : vector<8x32xf32>
    %c0_18 = arith.constant 0 : index
    %c0_19 = arith.constant 0 : index
    %27 = vector.load %arg9[%c0_18, %c0_19] : memref<32x128xf32, #tpu.memory_space<vmem>>, vector<32x128xf32>
    %cst_20 = arith.constant dense<0.000000e+00> : vector<8x128xf32>
    %28 = tpu.matmul %26, %27, %cst_20 {dimension_numbers = #tpu.dot_dimension_numbers<[1], [0], [0], [1], [0, 0, 1, 1], [], []>} : vector<8x32xf32>, vector<32x128xf32>, vector<8x128xf32> -> vector<8x128xf32>
    %c0_21 = arith.constant 0 : index
    %c0_22 = arith.constant 0 : index
    %29 = vector.load %arg10[%c0_21, %c0_22] : memref<1x128xf32, #tpu.memory_space<vmem>>, vector<1x128xf32>
    %30 = vector.broadcast %29 : vector<1x128xf32> to vector<8x128xf32>
    %31 = arith.addf %28, %30 : vector<8x128xf32>
    %32 = tpu.iota {dimensions = array<i32: 1>} : vector<8x128xi32>
    %c8_i32 = arith.constant 8 : i32
    %33 = vector.broadcast %c8_i32 : i32 to vector<8x128xi32>
    %34 = arith.cmpi slt, %32, %33 : vector<8x128xi32>
    %c0_23 = arith.constant 0 : index
    %c0_24 = arith.constant 0 : index
    %35 = vector.load %arg2[%c0_23, %c0_24] : memref<8x128xi32, #tpu.memory_space<vmem>>, vector<8x128xi32>
    %c0_i32 = arith.constant 0 : i32
    %36 = vector.broadcast %c0_i32 : i32 to vector<8x128xi32>
    %37 = arith.cmpi ne, %35, %36 : vector<8x128xi32>
    %cst_25 = arith.constant -9.999990e+05 : f32
    %38 = vector.broadcast %cst_25 : f32 to vector<8x128xf32>
    %39 = arith.select %37, %31, %38 : vector<8x128xi1>, vector<8x128xf32>
    %cst_26 = arith.constant 0xFF800000 : f32
    %40 = vector.broadcast %cst_26 : f32 to vector<8x128xf32>
    %41 = arith.select %34, %39, %40 : vector<8x128xi1>, vector<8x128xf32>
    %cst_27 = arith.constant dense<0xFF800000> : vector<8xf32>
    %42 = vector.multi_reduction <maximumf>, %41, %cst_27 [1] : vector<8x128xf32> to vector<8xf32>
    %43 = vector.shape_cast %42 : vector<8xf32> to vector<8x1xf32>
    %44 = vector.broadcast %43 : vector<8x1xf32> to vector<8x128xf32>
    %45 = arith.subf %41, %44 : vector<8x128xf32>
    %46 = math.exp %45 : vector<8x128xf32>
    %cst_28 = arith.constant dense<0.000000e+00> : vector<8xf32>
    %47 = vector.multi_reduction <add>, %46, %cst_28 [1] : vector<8x128xf32> to vector<8xf32>
    %48 = vector.shape_cast %47 : vector<8xf32> to vector<8x1xf32>
    %49 = vector.broadcast %48 : vector<8x1xf32> to vector<8x128xf32>
    %50 = arith.divf %46, %49 : vector<8x128xf32>
    %c8_i32_29 = arith.constant 8 : i32
    %51 = vector.broadcast %c8_i32_29 : i32 to vector<8x128xi32>
    %52 = arith.cmpi eq, %32, %51 : vector<8x128xi32>
    %cst_30 = arith.constant 0.000000e+00 : f32
    %53 = vector.broadcast %cst_30 : f32 to vector<8x128xf32>
    %54 = arith.select %52, %31, %53 : vector<8x128xi1>, vector<8x128xf32>
    %55 = arith.select %34, %50, %54 : vector<8x128xi1>, vector<8x128xf32>
    %c0_31 = arith.constant 0 : index
    %c0_32 = arith.constant 0 : index
    %56 = vector.load %arg11[%c0_31, %c0_32] : memref<8x128xf32, #tpu.memory_space<vmem>>, vector<8x128xf32>
    tpu.vector_store %arg11[%c0_31, %c0_32], %55 {strides = array<i32>} : memref<8x128xf32, #tpu.memory_space<vmem>>, vector<8x128xf32>,
    return
  }
  func.func @transform_0(%arg0: i32) -> (i32, i32) {
    %c0_i32 = arith.constant 0 : i32
    %c0_i32_0 = arith.constant 0 : i32
    return %arg0, %c0_i32 : i32, i32
  }
  func.func @transform_1(%arg0: i32) -> (i32, i32) {
    %c0_i32 = arith.constant 0 : i32
    %c0_i32_0 = arith.constant 0 : i32
    return %arg0, %c0_i32 : i32, i32
  }
  func.func @transform_2(%arg0: i32) -> (i32, i32) {
    %c0_i32 = arith.constant 0 : i32
    %c0_i32_0 = arith.constant 0 : i32
    return %arg0, %c0_i32 : i32, i32
  }
  func.func @transform_3(%arg0: i32) -> (i32, i32) {
    %c0_i32 = arith.constant 0 : i32
    %c0_i32_0 = arith.constant 0 : i32
    return %arg0, %c0_i32 : i32, i32
  }
  func.func @transform_4(%arg0: i32) -> (i32, i32) {
    %c0_i32 = arith.constant 0 : i32
    %c0_i32_0 = arith.constant 0 : i32
    %c0_i32_1 = arith.constant 0 : i32
    return %c0_i32, %c0_i32_0 : i32, i32
  }
  func.func @transform_5(%arg0: i32) -> (i32, i32) {
    %c0_i32 = arith.constant 0 : i32
    %c0_i32_0 = arith.constant 0 : i32
    %c0_i32_1 = arith.constant 0 : i32
    return %c0_i32, %c0_i32_0 : i32, i32
  }
  func.func @transform_6(%arg0: i32) -> (i32, i32) {
    %c0_i32 = arith.constant 0 : i32
    %c0_i32_0 = arith.constant 0 : i32
    %c0_i32_1 = arith.constant 0 : i32
    return %c0_i32, %c0_i32_0 : i32, i32
  }
  func.func @transform_7(%arg0: i32) -> (i32, i32) {
    %c0_i32 = arith.constant 0 : i32
    %c0_i32_0 = arith.constant 0 : i32
    %c0_i32_1 = arith.constant 0 : i32
    return %c0_i32, %c0_i32_0 : i32, i32
  }
  func.func @transform_8(%arg0: i32) -> (i32, i32) {
    %c0_i32 = arith.constant 0 : i32
    %c0_i32_0 = arith.constant 0 : i32
    %c0_i32_1 = arith.constant 0 : i32
    return %c0_i32, %c0_i32_0 : i32, i32
  }
  func.func @transform_9(%arg0: i32) -> (i32, i32) {
    %c0_i32 = arith.constant 0 : i32
    %c0_i32_0 = arith.constant 0 : i32
    %c0_i32_1 = arith.constant 0 : i32
    return %c0_i32, %c0_i32_0 : i32, i32
  }
  func.func @transform_10(%arg0: i32) -> (i32, i32) {
    %c0_i32 = arith.constant 0 : i32
    %c0_i32_0 = arith.constant 0 : i32
    return %arg0, %c0_i32 : i32, i32
  }
}

</mosaic_0001>

<bundles_post_ra>
// kernel: tpu_custom_call.1
= control target key start
LH: loop header
LB: loop body
LE: loop exit
PB: predicated region body
PF: predicated region fallthrough
CT: control target
= control target key end

     0   :  { %v437_v1 = vmov 0.0   ;;  %vm438_vm0 = vmmov 0   ;;  %s563_s0 = inlined_call_operand.vmem [shape: f32[8,16], index: 0, kind: input, shape index: {}]   ;;  %s564_s1 = inlined_call_operand.vmem [shape: s32[8,128], index: 1, kind: input, shape index: {}]   ;;  %s565_s2 = inlined_call_operand.vmem [shape: f32[8,64], index: 2, kind: input, shape index: {}]   ;;  %s566_s3 = inlined_call_operand.vmem [shape: f32[8,32], index: 3, kind: input, shape index: {}]   ;;  %s567_s4 = inlined_call_operand.vmem [shape: f32[16,64], index: 4, kind: input, shape index: {}]   ;;  %s568_s5 = inlined_call_operand.vmem [shape: f32[1,64], index: 5, kind: input, shape index: {}]   ;;  %s569_s6 = inlined_call_operand.vmem [shape: f32[64,32], index: 6, kind: input, shape index: {}]   ;;  %s570_s7 = inlined_call_operand.vmem [shape: f32[1,32], index: 7, kind: input, shape index: {}]   ;;  %s571_s8 = inlined_call_operand.vmem [shape: f32[32,128], index: 8, kind: input, shape index: {}]   ;;  %s572_s9 = inlined_call_operand.vmem [shape: f32[1,128], index: 9, kind: input, shape index: {}]   ;;  %s573_s10 = inlined_call_operand.hbm [shape: f32[8,128], index: 10, kind: output, shape index: {}]  }
   0x1   :  { %v38_v0 = vld [vmem:[%s567_s4 + $0x8] sm:$0xff]  ;;  %367 = vmatprep.subr.mxu0 %v437_v1  ;;  %v37_v2 = vld [vmem:[%s567_s4] sm:$0xff]  ;;  %371 = vmatprep.mubr.msk.f32.mxu0 %vm438_vm0, %v437_v1 }
   0x2   :  { %15 = vsyncpa [#allocation3], 0  ;;  %368 = vmatpush3.msra.mxu0 %v38_v0  ;;  %v36_v3 = vld [vmem:[%s563_s0] sm:$0xff]  ;;  %vm46_vm1 = vcmask 130048   ;;  %374 = vmatprep.subr.mxu1 %v437_v1  ;;  %v134_v4 = vld [vmem:[%s569_s6 + $0x38] sm:$0xff]  ;;  %vm142_vm3 = vcmask 523264   ;;  %v308_v36 = vlaneseq }
   0x3   :  { %369 = vmatprep.subr.mxu0 %v437_v1  ;;  %390 = vmatprep.mubr.msk.f32.mxu1 %vm438_vm0, %v437_v1  ;;  %v133_v5 = vld [vmem:[%s569_s6 + $0x30] sm:$0xff]  ;;  %v132_v6 = vld [vmem:[%s569_s6 + $0x28] sm:$0xff]  ;;  %v131_v7 = vld [vmem:[%s569_s6 + $0x20] sm:$0xff]  ;;  %vm234_vm5 = vcmask 261120  }
   0x4   :  { %370 = vmatpush3.msra.mxu0 %v37_v2  ;;  %375 = vmatpush3.msra.mxu1 %v134_v4  ;;  %v130_v8 = vld [vmem:[%s569_s6 + $0x18] sm:$0xff]  ;;  %v129_v9 = vld [vmem:[%s569_s6 + $0x10] sm:$0xff]  ;;  %v128_v10 = vld [vmem:[%s569_s6 + $0x8] sm:$0xff]  ;;  %v309_v37 = vand.u32 127, %v308_v36 }
   0x5   :  { %372 = vmatmul.mubr.msk.f32.vlgmr.msra.gmra.mxu0 %vm46_vm1, %v36_v3  ;;  %393 = vmatprep.subr.mxu0 %v437_v1  ;;  %v127_v11 = vld [vmem:[%s569_s6] sm:$0xff]  ;;  %v226_v22 = vld [vmem:[%s571_s8 + $0x18] sm:$0xff]  ;;  %v225_v23 = vld [vmem:[%s571_s8 + $0x10] sm:$0xff] }
   0x6   :  { %401 = vmatprep.mubr.msk.f32.mxu0 %vm438_vm0, %v437_v1  ;;  %376 = vmatprep.subr.mxu1 %v437_v1  ;;  %v342_v12 = vld [vmem:[%s568_s5] ss:$0 sm:$0xff]  ;;  %v224_v24 = vld [vmem:[%s571_s8 + $0x8] sm:$0xff]  ;;  %vm324_vm6 = vcmp.eq.s32.totalorder %v309_v37, 8  ;;  %vm310_vm8 = vcmp.lt.s32.totalorder %v309_v37, 8 }
   0x7   :  { %377 = vmatpush3.msra.mxu1 %v133_v5  ;;  %v125_v19 = vld [vmem:[%s565_s2] sm:$0xff]  ;;  %394 = vmatpush3.msra.mxu0 %v226_v22 }
   0x8   :  { %378 = vmatprep.subr.mxu1 %v437_v1  ;;  %395 = vmatprep.subr.mxu0 %v437_v1  ;;  %v223_v25 = vld [vmem:[%s571_s8] sm:$0xff] }
   0x9   :  { %379 = vmatpush3.msra.mxu1 %v132_v6  ;;  %396 = vmatpush3.msra.mxu0 %v225_v23  ;;  %v345_v26 = vld [vmem:[%s570_s7] ss:$0 sm:$0xff] }
   0xa   :  { %380 = vmatprep.subr.mxu1 %v437_v1  ;;  %397 = vmatprep.subr.mxu0 %v437_v1  ;;  %v221_v33 = vld [vmem:[%s566_s3] sm:$0xff] }
   0xb   :  { %381 = vmatpush3.msra.mxu1 %v131_v7  ;;  %398 = vmatpush3.msra.mxu0 %v224_v24  ;;  %v311_v38 = vld [vmem:[%s564_s1] sm:$0xff]  ;;  %s439_s1 = smov [#allocation2]  }
   0xc   :  { %382 = vmatprep.subr.mxu1 %v437_v1  ;;  %399 = vmatprep.subr.mxu0 %v437_v1  ;;  %v348_v39 = vld [vmem:[%s572_s9] ss:$0 sm:$0xff]  ;;  %vm312_vm7 = vcmp.ne.s32.totalorder %v311_v38, 0  ;;  %s334_s3 = sshll.u32 %s439_s1, 4  ;;  %s335_s3 = int_to_ptr.vmem [resolvable:$true] %s334_s3 }
   0xd   :  { %383 = vmatpush3.msra.mxu1 %v130_v8  ;;  %400 = vmatpush3.msra.mxu0 %v223_v25  ;;  %s415_s9 = scalar_lea.vmem %s335_s3, 128  ;;  %p420_p1 = scmp.lt.s32.totalorder %s335_s3, %s335_s3 }
   0xe   :  { %384 = vmatprep.subr.mxu1 %v437_v1  ;;  %p416_p0 = scmp.ne.s32.totalorder %s335_s3, %s415_s9  ;;  %p421_p2 = scmp.lt.s32.totalorder %s415_s9, %s415_s9 }
   0xf   :  { %385 = vmatpush3.msra.mxu1 %v129_v9 }
  0x10   :  { %386 = vmatprep.subr.mxu1 %v437_v1  ;;  %p422_p3 = por %p421_p2, %p420_p1 }
  0x11   :  { %387 = vmatpush3.msra.mxu1 %v128_v10 }
  0x12   :  { %388 = vmatprep.subr.mxu1 %v437_v1  ;;  %p423_p4 = pnand %p422_p3, %p416_p0 }
  0x13   :  { %389 = vmatpush3.msra.mxu1 %v127_v11 }
  0xc5   :  { %v116_v13 = vpop.f32.mrf.mxu0 }
  0xc6   :  { %v117_v14 = vadd.f32 %v342_v12, %v116_v13 }
  0xc7   :  { %v373_v15 = vpop.f32.mrf.mxu0 }
  0xc8   :  { %v121_v16 = vmul.f32 1.442695, %v117_v14  ;;  %vm120_vm2 = vcmp.gt.f32.partialorder %v117_v14, 0.0 }
  0xca   :  { %407 = vpow2.f32 %v121_v16 }
  0xd7   :  { %v408_v17 = vpop.eup %407 }
  0xd8   :  { %v344_v18 = vadd.f32 -1.0, %v408_v17 }
  0xda   :  { %v124_v20 = vsel %vm120_vm2, %v117_v14, %v344_v18 }
  0xdb   :  { %v126_v21 = vmul.f32 %v125_v19, %v124_v20 }
  0xdd   :  { %391 = vmatmul.mubr.msk.f32.vlgmr.msra.gmra.mxu1 %vm142_vm3, %v126_v21 }
 0x19d   :  { %v212_v27 = vpop.f32.mrf.mxu1 }
 0x19e   :  { %v213_v28 = vadd.f32 %v345_v26, %v212_v27 }
 0x19f   :  { %v392_v29 = vpop.f32.mrf.mxu1 }
 0x1a0   :  { %v217_v30 = vmul.f32 1.442695, %v213_v28  ;;  %vm216_vm4 = vcmp.gt.f32.partialorder %v213_v28, 0.0 }
 0x1a2   :  { %409 = vpow2.f32 %v217_v30 }
 0x1af   :  { %v410_v31 = vpop.eup %409 }
 0x1b0   :  { %v347_v32 = vadd.f32 -1.0, %v410_v31 }
 0x1b2   :  { %v220_v34 = vsel %vm216_vm4, %v213_v28, %v347_v32 }
 0x1b3   :  { %v222_v35 = vmul.f32 %v221_v33, %v220_v34 }
 0x1b5   :  { %402 = vmatmul.mubr.msk.f32.vlgmr.msra.gmra.mxu0 %vm234_vm5, %v222_v35 }
 0x275   :  { %v304_v40 = vpop.f32.mrf.mxu0 }
 0x276   :  { %v305_v41 = vadd.f32 %v348_v39, %v304_v40 }
 0x277   :  { %v403_v42 = vpop.f32.mrf.mxu0 }
 0x278   :  { %v325_v43 = vsel %vm324_vm6, %v305_v41, 0.0  ;;  %v313_v44 = vsel %vm312_vm7, %v305_v41, -999999.0 }
 0x279   :  { %v314_v45 = vsel %vm310_vm8, %v313_v44, -inf }
 0x27a   :  { %315 = vmax.xlane.f32.xlu0 %v314_v45 }
 0x303   :  { %v316_v46 = vpop.xlane.xlu0 %315 }
 0x304   :  { %v317_v47 = vsub.f32 %v314_v45, %v316_v46 }
 0x306   :  { %v318_v48 = vmul.f32 1.442695, %v317_v47 }
 0x308   :  { %411 = vpow2.f32 %v318_v48 }
 0x315   :  { %v412_v49 = vpop.eup %411 }
 0x316   :  { %320 = vadd.xlane.f32.xlu0 %v412_v49 }
 0x39f   :  { %v321_v50 = vpop.xlane.xlu0 %320 }
 0x3a0   :  { %413 = vrcp.f32 %v321_v50 }
 0x3ad   :  { %v414_v51 = vpop.eup %413 }
 0x3ae   :  { %v323_v52 = vmul.f32 %v414_v51, %v412_v49 }
 0x3b0   :  { %v326_v53 = vsel %vm310_vm8, %v323_v52, %v325_v43 }
 0x3b1   :  { %327 = vst [vmem:[#allocation2] sm:$0xff] %v326_v53 }
 0x3b2   :  { %426 = shalt.err (!%p423_p4)
}
 0x3b3   :  { %337 = dma.vmem_to_hbm [thread:$0]  %s335_s3, 128, %s573_s10, [#allocation3]  }
 0x3b4   :  { %435 = dma.done.wait [#allocation3], 128  }
 0x3b5   :  { %436 = vsyncadd [#allocation3], 4294967168 }
 0x3b6   :  { %341 = vsyncpa [#allocation3], 1 }

</bundles_post_ra>
